<compile_context>
chip_gen: v6e
topology: v6e:2x2x1
jax: 0.10.0
libtpu: 0.0.40
codegen_flags: <defaults>
</compile_context>

<pallas_src>
import jax
import jax.numpy as jnp
from jax.experimental import pallas as pl
from jax.experimental.pallas import tpu as pltpu


def _cdiv(a, b):
    return -(-a // b)


def _round_up(a, b):
    return _cdiv(a, b) * b


_DEF_BUF_BUDGET = 4 << 20  # 4 MiB per input block (double-buffered by Pallas)


def _make_mac_kernel(hw, hw_tile, n_hw_tiles, neg_fill):
    """Row-wise max over hw; running max across hw tiles when grid-tiled."""
    need_mask = (n_hw_tiles > 1) and (hw % hw_tile != 0)

    def _tile_max(x):
        # (row_tile, hw_tile) -> (1, 1, row_tile): rows land on the lane axis
        # so the store is lane-dense (unmasked vst when row_tile % 128 == 0).
        # TODO(synk): for hw <= ~256 an in-kernel XLU transpose + sublane
        # reduce would cut the lane-reduce XLU work further; kept the simpler
        # lane-reduce form for lowering robustness.
        return jnp.max(x, axis=-1)[None, None, :]

    if n_hw_tiles == 1:
        def kernel(x_ref, o_ref):
            o_ref[...] = _tile_max(x_ref[...])
        return kernel

    def kernel(x_ref, o_ref):
        k = pl.program_id(1)

        def _accumulate(x):
            m = _tile_max(x)

            @pl.when(k == 0)
            def _init():
                o_ref[...] = m

            @pl.when(k > 0)
            def _acc():
                o_ref[...] = jnp.maximum(o_ref[...], m)

        if not need_mask:
            _accumulate(x_ref[...])
        else:
            # Only the last hw tile can contain out-of-range lanes; every
            # other step skips the iota/compare/select entirely.
            @pl.when(k < n_hw_tiles - 1)
            def _full():
                _accumulate(x_ref[...])

            @pl.when(k == n_hw_tiles - 1)
            def _last():
                x = x_ref[...]
                lane = jax.lax.broadcasted_iota(jnp.int32, x.shape, 1)
                n_valid = hw - (n_hw_tiles - 1) * hw_tile
                x = jnp.where(lane < n_valid, x,
                              jnp.asarray(neg_fill, dtype=x.dtype))
                _accumulate(x)

    return kernel


def mac_pool(x: jax.Array, max_buffer_bytes: int | None = None) -> jax.Array:
    """Global spatial max pooling, equivalent to F.max_pool2d(x, (H, W)).

    x: (N, C, H, W) -> (N, C, 1, 1)
    """
    N, C, H, W = x.shape
    rows = N * C
    hw = H * W
    x2 = x.reshape(rows, hw)

    dsize = x.dtype.itemsize
    row_align = 8 * max(1, 4 // dsize)   # 8 f32 / 16 bf16 / 32 int8 sublanes

    buf_budget = _DEF_BUF_BUDGET if max_buffer_bytes is None else max_buffer_bytes

    # ---- hw (spatial) tiling: keep whole rows resident unless huge ----------
    hw_lanes_full = _round_up(hw, 128)
    if row_align * hw_lanes_full * dsize <= buf_budget:
        hw_tile = hw                      # full-dim block: always legal
        hw_lanes = hw_lanes_full
    else:
        hw_tile = max(128, ((buf_budget // (row_align * dsize)) // 128) * 128)
        hw_lanes = hw_tile
    n_hw_tiles = _cdiv(hw, hw_tile)

    # ---- row tiling: >=2 even tiles (budget-capped, 128-aligned if possible)
    if rows < 2 * row_align:
        row_tile = rows                   # full-dim block: always legal
    else:
        tile_align = 128 if rows >= 2 * 128 else row_align
        max_tile = max(tile_align,
                       ((buf_budget // (hw_lanes * dsize)) // tile_align) * tile_align)
        n_target = max(2, _cdiv(rows, max_tile))
        if n_target % 2:
            n_target += 1                 # even tile count -> both v7x TCs busy
        row_tile = _round_up(_cdiv(rows, n_target), tile_align)
    n_row_tiles = _cdiv(rows, row_tile)

    if jnp.issubdtype(x.dtype, jnp.floating):
        neg_fill = float("-inf")
    elif jnp.issubdtype(x.dtype, jnp.integer):
        neg_fill = int(jnp.iinfo(x.dtype).min)
    else:
        raise TypeError(f"unsupported dtype for MAC: {x.dtype}")

    kernel = _make_mac_kernel(hw, hw_tile, n_hw_tiles, neg_fill)

    # ---- VMEM limit from actual usage (2x double-buffered in + out blocks) --
    in_block_bytes = _round_up(row_tile, row_align) * hw_lanes * dsize
    out_block_bytes = 8 * _round_up(row_tile, 128) * max(dsize, 4)
    vmem_need = 2 * in_block_bytes + 2 * out_block_bytes
    vmem_limit = int(min(64 << 20, max(16 << 20, 2 * vmem_need + (2 << 20))))

    cost = pl.CostEstimate(
        flops=rows * hw,
        transcendentals=0,
        bytes_accessed=rows * hw * dsize + rows * dsize,
    )

    out = pl.pallas_call(
        kernel,
        out_shape=jax.ShapeDtypeStruct((n_row_tiles, 1, row_tile), x.dtype),
        grid_spec=pltpu.PrefetchScalarGridSpec(
            num_scalar_prefetch=0,
            grid=(n_row_tiles, n_hw_tiles),
            in_specs=[pl.BlockSpec((row_tile, hw_tile), lambda i, k: (i, k))],
            out_specs=pl.BlockSpec((1, 1, row_tile), lambda i, k: (i, 0, 0)),
        ),
        compiler_params=pltpu.CompilerParams(
            dimension_semantics=("parallel", "arbitrary"),
            vmem_limit_bytes=vmem_limit,
        ),
        cost_estimate=cost,
    )(x2)

    flat = out.reshape(n_row_tiles * row_tile)
    if n_row_tiles * row_tile != rows:
        flat = flat[:rows]                # drop padded rows of the last tile
    return flat.reshape(N, C, 1, 1)


if __name__ == "__main__":
    key = jax.random.PRNGKey(0)
    k1, k2, k3 = jax.random.split(key, 3)

    # Primary check (spec-sized input): single-tile path, lane-dense output.
    x = jax.random.normal(k1, (2, 4, 16, 16), dtype=jnp.float32)
    y = mac_pool(x)
    jax.block_until_ready(y)
    y_ref = jnp.max(x, axis=(-2, -1), keepdims=True)
    assert y.shape == (2, 4, 1, 1), y.shape
    assert jnp.array_equal(y, y_ref), "mismatch vs reference (primary)"

    # Representative CNN global-pool shape: rows split into 2 even, 128-aligned
    # "parallel" tiles with unmasked lane-dense stores.
    x3 = jax.random.normal(k3, (4, 512, 14, 14), dtype=jnp.float32)
    y3 = mac_pool(x3)
    jax.block_until_ready(y3)
    y3_ref = jnp.max(x3, axis=(-2, -1), keepdims=True)
    assert y3.shape == (4, 512, 1, 1), y3.shape
    assert jnp.array_equal(y3, y3_ref), "mismatch vs reference (row-tiled)"

    # Tiny forced buffer budget: exercises the hw-tiled running-max path with
    # the -inf mask applied only on the last (partial) hw tile.
    x2 = jax.random.normal(k2, (2, 7, 24, 24), dtype=jnp.float32)
    y2 = mac_pool(x2, max_buffer_bytes=16 * 1024)
    jax.block_until_ready(y2)
    y2_ref = jnp.max(x2, axis=(-2, -1), keepdims=True)
    assert y2.shape == (2, 7, 1, 1), y2.shape
    assert jnp.array_equal(y2, y2_ref), "mismatch vs reference (hw-tiled+masked)"

    print("KERNEL_OK")
</pallas_src>

<mosaic_0001>
module attributes {stable_mosaic.version = 11 : i64} {
  func.func @kernel(%arg0: i32, %arg1: i32, %arg2: memref<8x256xf32, #tpu.memory_space<vmem>>, %arg3: memref<1x1x8xf32, #tpu.memory_space<vmem>>) attributes {dimension_semantics = [#tpu.dimension_semantics<parallel>, #tpu.dimension_semantics<arbitrary>], iteration_bounds = array<i64: 1, 1>, scalar_prefetch = 0 : i64, scratch_operands = 0 : i64, tpu.core_type = #tpu.core_type<tc>, window_params = [{transform_indices = @transform_0, window_bounds = array<i64: 8, 256>}, {transform_indices = @transform_1, window_bounds = array<i64: 1, 1, 8>}]} {
    %c0 = arith.constant 0 : index
    %c0_0 = arith.constant 0 : index
    %0 = vector.load %arg2[%c0, %c0_0] : memref<8x256xf32, #tpu.memory_space<vmem>>, vector<8x256xf32>
    %cst = arith.constant dense<0xFF800000> : vector<8xf32>
    %1 = vector.multi_reduction <maximumf>, %0, %cst [1] : vector<8x256xf32> to vector<8xf32>
    %2 = vector.shape_cast %1 : vector<8xf32> to vector<1x1x8xf32>
    %c0_1 = arith.constant 0 : index
    %c0_2 = arith.constant 0 : index
    %c0_3 = arith.constant 0 : index
    %3 = vector.load %arg3[%c0_1, %c0_2, %c0_3] : memref<1x1x8xf32, #tpu.memory_space<vmem>>, vector<1x1x8xf32>
    tpu.vector_store %arg3[%c0_1, %c0_2, %c0_3], %2 {strides = array<i32>} : memref<1x1x8xf32, #tpu.memory_space<vmem>>, vector<1x1x8xf32>,
    return
  }
  func.func @transform_0(%arg0: i32, %arg1: i32) -> (i32, i32) {
    %c0_i32 = arith.constant 0 : i32
    return %arg0, %arg1 : i32, i32
  }
  func.func @transform_1(%arg0: i32, %arg1: i32) -> (i32, i32, i32) {
    %c0_i32 = arith.constant 0 : i32
    %c0_i32_0 = arith.constant 0 : i32
    %c0_i32_1 = arith.constant 0 : i32
    return %arg0, %c0_i32, %c0_i32_0 : i32, i32, i32
  }
}

</mosaic_0001>

<bundles_post_ra>
// kernel: tpu_custom_call.1
= control target key start
LH: loop header
LB: loop body
LE: loop exit
PB: predicated region body
PF: predicated region fallthrough
CT: control target
= control target key end

     0   :  { %6 = vsyncpa [#allocation3], 0  ;;  %s115_s0 = inlined_call_operand.hbm [shape: f32[8,256], index: 0, kind: input, shape index: {}]   ;;  %s116_s1 = inlined_call_operand.hbm [shape: f32[1,1,8], index: 1, kind: output, shape index: {}]  }
   0x1   :  { %7 = vsyncpa [#allocation4], 0  ;;  %s97_s6 = smov [#allocation2]  }
   0x2   :  { %s14_s7 = sshll.u32 %s97_s6, 4  ;;  %s15_s7 = int_to_ptr.vmem [resolvable:$true] %s14_s7 }
   0x3   :  { %s61_s8 = scalar_lea.vmem %s15_s7, 256  ;;  %p66_p1 = scmp.lt.s32.totalorder %s15_s7, %s15_s7 }
   0x4   :  { %p62_p0 = scmp.ne.s32.totalorder %s15_s7, %s61_s8  ;;  %p67_p2 = scmp.lt.s32.totalorder %s61_s8, %s61_s8 }
   0x6   :  { %p68_p3 = por %p67_p2, %p66_p1 }
   0x8   :  { %p69_p4 = pnand %p68_p3, %p62_p0 }
   0xa   :  { %72 = shalt.err (!%p69_p4)
}
   0xb   :  { %17 = dma.hbm_to_vmem [thread:$0]  %s115_s0, 256, %s15_s7, [#allocation3]  }
   0xc   :  { %93 = dma.done.wait [#allocation3], 256  }
   0xd   :  { %94 = vsyncadd [#allocation3], 4294967040  ;;  %v21_v0 = vld [vmem:[#allocation2] sm:$0xff]  ;;  %v22_v1 = vld [vmem:[#allocation2 + $0x8] sm:$0xff]  ;;  %v27_v3 = vlaneseq  ;;  %s98_s11 = smov [#allocation5]   ;;  %vm34_vm0 = vcmask 57344  }
   0xe   :  { %v23_v2 = vmax.f32 %v21_v0, %v22_v1  ;;  %s42_s12 = sshll.u32 %s98_s11, 4  ;;  %s43_s12 = int_to_ptr.vmem [resolvable:$true] %s42_s12 }
   0xf   :  { %v28_v4 = vand.u32 127, %v27_v3  ;;  %v30_v5 = vshrl.u32 %v27_v3, 7  ;;  %s73_s13 = scalar_lea.vmem %s43_s12, 16  ;;  %s77_s0 = scalar_lea.vmem %s43_s12, 32 }
  0x10   :  { %24 = vmax.xlane.f32.xlu0 %v23_v2  ;;  %p74_p5 = scmp.ne.s32.totalorder %s43_s12, %s73_s13  ;;  %p78_p6 = scmp.lt.s32.totalorder %s43_s12, %s43_s12 }
  0x11   :  { %v31_v6 = vsub.s32 %v28_v4, %v30_v5  ;;  %p79_p7 = scmp.lt.s32.totalorder %s77_s0, %s73_s13 }
  0x13   :  { %p80_p8 = por %p79_p7, %p78_p6 }
  0x15   :  { %p81_p9 = pnand %p80_p8, %p74_p5 }
  0x99   :  { %v25_v7 = vpop.xlane.xlu0 %24 }
  0x9a   :  { %v32_v8 = vrot.slane %v25_v7, %v31_v6 }
  0x9c   :  { %35 = vst.msk [vmem:[#allocation5] sm:$0x1] %vm34_vm0, %v32_v8 }
  0x9d   :  { %84 = shalt.err (!%p81_p9)
}
  0x9e   :  { %45 = dma.vmem_to_hbm [thread:$0]  %s43_s12, 16, %s116_s1, [#allocation4]  }
  0x9f   :  { %95 = dma.done.wait [#allocation4], 16  }
  0xa0   :  { %96 = vsyncadd [#allocation4], 4294967280 }
  0xa1   :  { %49 = vsyncpa [#allocation3], 1 }
  0xa2   :  { %50 = vsyncpa [#allocation4], 1 }

</bundles_post_ra>
